<compile_context>
chip_gen: v7x
topology: tpu7x:2x2x1
jax: 0.10.0
libtpu: 0.0.40
codegen_flags: <defaults>
</compile_context>

<pallas_src>
import jax
import jax.numpy as jnp
from jax.experimental import pallas as pl
from jax.experimental.pallas import tpu as pltpu


def _const_spec(shape):
    """BlockSpec for a grid-invariant (constant index_map) operand.

    Buffered(1): the block never changes across grid steps, so multi-buffering only wastes
    VMEM.  Falls back to a plain BlockSpec if this jax version lacks pipeline_mode/Buffered.
    """
    idx = lambda i: (0, 0)
    try:
        return pl.BlockSpec(shape, idx, pipeline_mode=pl.Buffered(1))
    except (TypeError, AttributeError, ValueError):
        return pl.BlockSpec(shape, idx)


def _make_fused_kernel(n, tile_n):
    full_rows = (tile_n == n)

    def kernel(a_ref, x_ref, w1_ref, b1_ref, al1_ref, w2_ref, b2_ref, al2_ref,
               o_ref, xw2_ref):
        """Fused 2-layer GCN.  a_ref is the full [N, N] bf16 adjacency (VMEM-resident);
        xw2_ref is a VMEM scratch holding h1 @ W2 (computed once at grid step 0)."""
        i = pl.program_id(0)

        @pl.when(i == 0)
        def _():
            # ---- layer 1 over ALL nodes (stays in VMEM, never hits HBM) ----
            xw1 = jnp.dot(x_ref[...], w1_ref[...],
                          preferred_element_type=jnp.float32)          # [N, Hp] f32
            h1 = jnp.dot(a_ref[...], xw1.astype(jnp.bfloat16),
                         preferred_element_type=jnp.float32)           # [N, Hp] f32
            h1 = h1 + b1_ref[...]                                      # bias (f32 VPU)
            h1 = jnp.where(h1 >= 0, h1, al1_ref[...] * h1)             # per-channel PReLU
            # ---- hoisted layer-2 feature transform: XW2 = h1 @ W2, done once ----
            xw2_ref[...] = jnp.dot(h1.astype(jnp.bfloat16), w2_ref[...],
                                   preferred_element_type=jnp.float32
                                   ).astype(xw2_ref.dtype)

        # ---- layer 2 aggregation for this node tile: PReLU(A_tile @ XW2 + b2) ----
        if full_rows:
            a_tile = a_ref[...]                                        # grid==1: no slice
        else:
            # TODO(synk): verify via pl.lower_as_mlir that this lowers to strided loads
            # rather than a per-step VMEM copy when the streamed/tiled path is used.
            start = pl.multiple_of(i * tile_n, tile_n)
            a_tile = a_ref[pl.ds(start, tile_n), :]                    # [tile_n, N] bf16
        h2 = jnp.dot(a_tile, xw2_ref[...], preferred_element_type=jnp.float32)
        h2 = h2 + b2_ref[...]
        o_ref[...] = jnp.where(h2 >= 0, h2, al2_ref[...] * h2).astype(o_ref.dtype)

    return kernel


def prepare_params(params):
    """One-time padding/casting of weights (hoisted out of the per-call hot path)."""
    f_in, hid = params["w1"].shape
    hp = ((hid + 127) // 128) * 128          # lane-dense padded hidden width

    def pad_cols(m, width):
        return jnp.pad(m, ((0, 0), (0, width - m.shape[1])))

    return {
        "f_in": f_in, "hid": hid, "hp": hp,
        "w1": pad_cols(params["w1"], hp).astype(jnp.bfloat16),                     # [F, Hp]
        "w2": jnp.pad(params["w2"],
                      ((0, hp - hid), (0, hp - hid))).astype(jnp.bfloat16),        # [Hp, Hp]
        "b1": pad_cols(params["b1"].reshape(1, hid), hp).astype(jnp.float32),
        "b2": pad_cols(params["b2"].reshape(1, hid), hp).astype(jnp.float32),
        "alpha1": pad_cols(params["alpha1"].reshape(1, hid), hp).astype(jnp.float32),
        "alpha2": pad_cols(params["alpha2"].reshape(1, hid), hp).astype(jnp.float32),
    }


def graph_encoder_forward(x, a_norm_bf16, prep, *, tile_n=None):
    """GraphEncoder.forward: conv -> prelu -> conv2 -> prelu2 (single fused kernel).

    `a_norm_bf16` and `prep` are expected to be prepared once and reused across calls.
    Returns [N, hidden] bf16.
    """
    n, f_in = x.shape
    hid, hp = prep["hid"], prep["hp"]
    assert f_in == prep["f_in"]

    if tile_n is None:
        # Resident-A regime: one big step (no useless grid steps).  Larger N: 256-row tiles
        # to fill the 256-wide v6e/v7x MXU.  (v5e users can pass tile_n=128 explicitly.)
        tile_n = n if n <= 1024 else 256
    tile_n = min(tile_n, n)
    assert n % tile_n == 0 and tile_n % 8 == 0, "N must be a multiple of tile_n (and 8)"

    x_bf = x.astype(jnp.bfloat16)

    # ---- explicit VMEM budget (Buffered(1) on all constant blocks => single copy each) ----
    vmem_bytes = (
        n * n * 2                                    # resident A (bf16)
        + n * f_in * 2 + f_in * hp * 2 + hp * hp * 2 # X, W1, W2 (bf16)
        + 4 * hp * 4                                 # biases / alphas (f32)
        + n * hp * 2                                 # XW2 scratch (bf16)
        + 2 * tile_n * hp * 2                        # double-buffered bf16 output tile
        + n * hp * (4 + 2 + 4)                       # step-0 temporaries: xw1 f32, bf16 cast, h1 f32
    )
    vmem_limit = int(min(max(2 * vmem_bytes + (1 << 20), 16 << 20), 96 << 20))

    flops = (2 * n * f_in * hp + 2 * n * n * hp      # layer 1 (padded Hp = actual MXU work)
             + 2 * n * hp * hp + 2 * n * n * hp)     # layer 2
    bytes_accessed = (n * n * 2 + n * f_in * 2 + f_in * hp * 2 + hp * hp * 2
                      + 4 * hp * 4 + n * hp * 2)

    out = pl.pallas_call(
        _make_fused_kernel(n, tile_n),
        out_shape=jax.ShapeDtypeStruct((n, hp), jnp.bfloat16),
        grid_spec=pltpu.PrefetchScalarGridSpec(
            num_scalar_prefetch=0,
            grid=(n // tile_n,),
            in_specs=[
                _const_spec((n, n)),        # A_norm (resident, bf16, single-buffered)
                _const_spec((n, f_in)),     # X (bf16)
                _const_spec((f_in, hp)),    # W1 (bf16)
                _const_spec((1, hp)),       # b1
                _const_spec((1, hp)),       # alpha1
                _const_spec((hp, hp)),      # W2 (bf16)
                _const_spec((1, hp)),       # b2
                _const_spec((1, hp)),       # alpha2
            ],
            out_specs=pl.BlockSpec((tile_n, hp), lambda i: (i, 0)),
            scratch_shapes=[pltpu.VMEM((n, hp), jnp.bfloat16)],   # hoisted XW2
        ),
        compiler_params=pltpu.CompilerParams(
            # step-0 scratch is reused by later tiles -> sequential grid axis
            dimension_semantics=("arbitrary",),
            vmem_limit_bytes=vmem_limit),
        cost_estimate=pl.CostEstimate(flops=flops, transcendentals=0,
                                      bytes_accessed=bytes_accessed),
    )(a_norm_bf16, x_bf, prep["w1"], prep["b1"], prep["alpha1"],
      prep["w2"], prep["b2"], prep["alpha2"])

    return out[:, :hid]


def build_normalized_adjacency(edge_index, n):
    """Dense D^{-1/2} (A + I) D^{-1/2}, matching PyG gcn_norm with self-loops.
    Note: duplicate edges collapse to weight 1 (fine for the random test graph)."""
    src, dst = edge_index[0], edge_index[1]
    a = jnp.zeros((n, n), jnp.float32)
    a = a.at[dst, src].set(1.0)                       # A_hat[dst, src] = 1
    a = a.at[jnp.arange(n), jnp.arange(n)].set(1.0)   # self-loops
    deg = a.sum(axis=1)
    dinv = jnp.where(deg > 0, 1.0 / jnp.sqrt(deg), 0.0)
    return dinv[:, None] * a * dinv[None, :]


def init_params(key, in_channels, hidden_channels):
    k1, k2 = jax.random.split(key)
    s1 = (6.0 / (in_channels + hidden_channels)) ** 0.5
    s2 = (6.0 / (hidden_channels + hidden_channels)) ** 0.5
    return {
        "w1": jax.random.uniform(k1, (in_channels, hidden_channels),
                                 jnp.float32, -s1, s1),
        "b1": jnp.zeros((hidden_channels,), jnp.float32),
        # nn.PReLU(hidden_channels): per-channel alpha, PyTorch default init 0.25
        "alpha1": jnp.full((hidden_channels,), 0.25, jnp.float32),
        "w2": jax.random.uniform(k2, (hidden_channels, hidden_channels),
                                 jnp.float32, -s2, s2),
        "b2": jnp.zeros((hidden_channels,), jnp.float32),
        "alpha2": jnp.full((hidden_channels,), 0.25, jnp.float32),
    }


def reference_forward(x, a_norm, params):
    """Plain-JAX reference with the same bf16-matmul / f32-accumulate mixed precision."""
    a = a_norm.astype(jnp.bfloat16)

    def layer(a, xin, w, b, alpha):
        xw = jnp.dot(xin.astype(jnp.bfloat16), w.astype(jnp.bfloat16),
                     preferred_element_type=jnp.float32)
        h = jnp.dot(a, xw.astype(jnp.bfloat16),
                    preferred_element_type=jnp.float32) + b[None, :]
        return jnp.where(h >= 0, h, alpha[None, :] * h)

    h1 = layer(a, x, params["w1"], params["b1"], params["alpha1"])
    return layer(a, h1, params["w2"], params["b2"], params["alpha2"])


if __name__ == "__main__":
    N = 128            # number of graph nodes
    IN_CH = 16         # in_channels
    HID = 32           # hidden_channels
    E = 512            # number of random edges

    key = jax.random.PRNGKey(0)
    kx, ke, kp = jax.random.split(key, 3)

    x = jax.random.normal(kx, (N, IN_CH), jnp.float32)
    edge_index = jax.random.randint(ke, (2, E), 0, N, jnp.int32)
    a_norm = build_normalized_adjacency(edge_index, N)
    params = init_params(kp, IN_CH, HID)

    # One-time prep (cached across forward calls): bf16 adjacency + padded/cast weights.
    a_bf = a_norm.astype(jnp.bfloat16)
    prep = prepare_params(params)

    out = graph_encoder_forward(x, a_bf, prep)
    out = jax.block_until_ready(out)

    ref = reference_forward(x, a_norm, params)
    ref_bf = ref.astype(jnp.bfloat16).astype(jnp.float32)   # kernel emits bf16
    out_f32 = out.astype(jnp.float32)
    assert out.shape == (N, HID)
    assert jnp.allclose(out_f32, ref_bf, atol=1e-2, rtol=1e-2), \
        f"max abs err {jnp.max(jnp.abs(out_f32 - ref_bf))}"

    print("KERNEL_OK")
</pallas_src>

<mosaic_0001>
module attributes {stable_mosaic.version = 11 : i64} {
  func.func @kernel(%arg0: i32, %arg1: memref<128x128xbf16, #tpu.memory_space<vmem>>, %arg2: memref<128x16xbf16, #tpu.memory_space<vmem>>, %arg3: memref<16x128xbf16, #tpu.memory_space<vmem>>, %arg4: memref<1x128xf32, #tpu.memory_space<vmem>>, %arg5: memref<1x128xf32, #tpu.memory_space<vmem>>, %arg6: memref<128x128xbf16, #tpu.memory_space<vmem>>, %arg7: memref<1x128xf32, #tpu.memory_space<vmem>>, %arg8: memref<1x128xf32, #tpu.memory_space<vmem>>, %arg9: memref<128x128xbf16, #tpu.memory_space<vmem>>, %arg10: memref<128x128xbf16, #tpu.memory_space<vmem>>) attributes {dimension_semantics = [#tpu.dimension_semantics<arbitrary>], iteration_bounds = array<i64: 1>, scalar_prefetch = 0 : i64, scratch_operands = 1 : i64, tpu.core_type = #tpu.core_type<tc>, window_params = [{pipeline_mode = #tpu.pipeline_mode<synchronous>, transform_indices = @transform_0, window_bounds = array<i64: 128, 128>}, {pipeline_mode = #tpu.pipeline_mode<synchronous>, transform_indices = @transform_1, window_bounds = array<i64: 128, 16>}, {pipeline_mode = #tpu.pipeline_mode<synchronous>, transform_indices = @transform_2, window_bounds = array<i64: 16, 128>}, {pipeline_mode = #tpu.pipeline_mode<synchronous>, transform_indices = @transform_3, window_bounds = array<i64: 1, 128>}, {pipeline_mode = #tpu.pipeline_mode<synchronous>, transform_indices = @transform_4, window_bounds = array<i64: 1, 128>}, {pipeline_mode = #tpu.pipeline_mode<synchronous>, transform_indices = @transform_5, window_bounds = array<i64: 128, 128>}, {pipeline_mode = #tpu.pipeline_mode<synchronous>, transform_indices = @transform_6, window_bounds = array<i64: 1, 128>}, {pipeline_mode = #tpu.pipeline_mode<synchronous>, transform_indices = @transform_7, window_bounds = array<i64: 1, 128>}, {transform_indices = @transform_8, window_bounds = array<i64: 128, 128>}]} {
    %c0_i32 = arith.constant 0 : i32
    %0 = arith.cmpi eq, %arg0, %c0_i32 : i32
    %1 = arith.extui %0 : i1 to i32
    %c0_i32_0 = arith.constant 0 : i32
    %2 = arith.cmpi ne, %1, %c0_i32_0 : i32
    scf.if %2 {
      %c0_11 = arith.constant 0 : index
      %c0_12 = arith.constant 0 : index
      %17 = vector.load %arg2[%c0_11, %c0_12] : memref<128x16xbf16, #tpu.memory_space<vmem>>, vector<128x16xbf16>
      %c0_13 = arith.constant 0 : index
      %c0_14 = arith.constant 0 : index
      %18 = vector.load %arg3[%c0_13, %c0_14] : memref<16x128xbf16, #tpu.memory_space<vmem>>, vector<16x128xbf16>
      %cst_15 = arith.constant dense<0.000000e+00> : vector<128x128xf32>
      %19 = tpu.matmul %17, %18, %cst_15 {dimension_numbers = #tpu.dot_dimension_numbers<[1], [0], [0], [1], [0, 0, 1, 1], [], []>} : vector<128x16xbf16>, vector<16x128xbf16>, vector<128x128xf32> -> vector<128x128xf32>
      %c0_16 = arith.constant 0 : index
      %c0_17 = arith.constant 0 : index
      %20 = vector.load %arg1[%c0_16, %c0_17] : memref<128x128xbf16, #tpu.memory_space<vmem>>, vector<128x128xbf16>
      %21 = arith.truncf %19 : vector<128x128xf32> to vector<128x128xbf16>
      %cst_18 = arith.constant dense<0.000000e+00> : vector<128x128xf32>
      %22 = tpu.matmul %20, %21, %cst_18 {dimension_numbers = #tpu.dot_dimension_numbers<[1], [0], [0], [1], [0, 0, 1, 1], [], []>} : vector<128x128xbf16>, vector<128x128xbf16>, vector<128x128xf32> -> vector<128x128xf32>
      %c0_19 = arith.constant 0 : index
      %c0_20 = arith.constant 0 : index
      %23 = vector.load %arg4[%c0_19, %c0_20] : memref<1x128xf32, #tpu.memory_space<vmem>>, vector<1x128xf32>
      %24 = vector.broadcast %23 : vector<1x128xf32> to vector<128x128xf32>
      %25 = arith.addf %22, %24 : vector<128x128xf32>
      %cst_21 = arith.constant 0.000000e+00 : f32
      %26 = vector.broadcast %cst_21 : f32 to vector<128x128xf32>
      %27 = arith.cmpf oge, %25, %26 : vector<128x128xf32>
      %c0_22 = arith.constant 0 : index
      %c0_23 = arith.constant 0 : index
      %28 = vector.load %arg5[%c0_22, %c0_23] : memref<1x128xf32, #tpu.memory_space<vmem>>, vector<1x128xf32>
      %29 = vector.broadcast %28 : vector<1x128xf32> to vector<128x128xf32>
      %30 = arith.mulf %29, %25 : vector<128x128xf32>
      %31 = arith.select %27, %25, %30 : vector<128x128xi1>, vector<128x128xf32>
      %32 = arith.truncf %31 : vector<128x128xf32> to vector<128x128xbf16>
      %c0_24 = arith.constant 0 : index
      %c0_25 = arith.constant 0 : index
      %33 = vector.load %arg6[%c0_24, %c0_25] : memref<128x128xbf16, #tpu.memory_space<vmem>>, vector<128x128xbf16>
      %cst_26 = arith.constant dense<0.000000e+00> : vector<128x128xf32>
      %34 = tpu.matmul %32, %33, %cst_26 {dimension_numbers = #tpu.dot_dimension_numbers<[1], [0], [0], [1], [0, 0, 1, 1], [], []>} : vector<128x128xbf16>, vector<128x128xbf16>, vector<128x128xf32> -> vector<128x128xf32>
      %35 = arith.truncf %34 : vector<128x128xf32> to vector<128x128xbf16>
      %c0_27 = arith.constant 0 : index
      %c0_28 = arith.constant 0 : index
      %36 = vector.load %arg10[%c0_27, %c0_28] : memref<128x128xbf16, #tpu.memory_space<vmem>>, vector<128x128xbf16>
      tpu.vector_store %arg10[%c0_27, %c0_28], %35 {strides = array<i32>} : memref<128x128xbf16, #tpu.memory_space<vmem>>, vector<128x128xbf16>,
    } else {
    }
    %c0 = arith.constant 0 : index
    %c0_1 = arith.constant 0 : index
    %3 = vector.load %arg1[%c0, %c0_1] : memref<128x128xbf16, #tpu.memory_space<vmem>>, vector<128x128xbf16>
    %c0_2 = arith.constant 0 : index
    %c0_3 = arith.constant 0 : index
    %4 = vector.load %arg10[%c0_2, %c0_3] : memref<128x128xbf16, #tpu.memory_space<vmem>>, vector<128x128xbf16>
    %cst = arith.constant dense<0.000000e+00> : vector<128x128xf32>
    %5 = tpu.matmul %3, %4, %cst {dimension_numbers = #tpu.dot_dimension_numbers<[1], [0], [0], [1], [0, 0, 1, 1], [], []>} : vector<128x128xbf16>, vector<128x128xbf16>, vector<128x128xf32> -> vector<128x128xf32>
    %c0_4 = arith.constant 0 : index
    %c0_5 = arith.constant 0 : index
    %6 = vector.load %arg7[%c0_4, %c0_5] : memref<1x128xf32, #tpu.memory_space<vmem>>, vector<1x128xf32>
    %7 = vector.broadcast %6 : vector<1x128xf32> to vector<128x128xf32>
    %8 = arith.addf %5, %7 : vector<128x128xf32>
    %cst_6 = arith.constant 0.000000e+00 : f32
    %9 = vector.broadcast %cst_6 : f32 to vector<128x128xf32>
    %10 = arith.cmpf oge, %8, %9 : vector<128x128xf32>
    %c0_7 = arith.constant 0 : index
    %c0_8 = arith.constant 0 : index
    %11 = vector.load %arg8[%c0_7, %c0_8] : memref<1x128xf32, #tpu.memory_space<vmem>>, vector<1x128xf32>
    %12 = vector.broadcast %11 : vector<1x128xf32> to vector<128x128xf32>
    %13 = arith.mulf %12, %8 : vector<128x128xf32>
    %14 = arith.select %10, %8, %13 : vector<128x128xi1>, vector<128x128xf32>
    %15 = arith.truncf %14 : vector<128x128xf32> to vector<128x128xbf16>
    %c0_9 = arith.constant 0 : index
    %c0_10 = arith.constant 0 : index
    %16 = vector.load %arg9[%c0_9, %c0_10] : memref<128x128xbf16, #tpu.memory_space<vmem>>, vector<128x128xbf16>
    tpu.vector_store %arg9[%c0_9, %c0_10], %15 {strides = array<i32>} : memref<128x128xbf16, #tpu.memory_space<vmem>>, vector<128x128xbf16>,
    return
  }
  func.func @transform_0(%arg0: i32) -> (i32, i32) {
    %c0_i32 = arith.constant 0 : i32
    %c0_i32_0 = arith.constant 0 : i32
    %c0_i32_1 = arith.constant 0 : i32
    return %c0_i32, %c0_i32_0 : i32, i32
  }
  func.func @transform_1(%arg0: i32) -> (i32, i32) {
    %c0_i32 = arith.constant 0 : i32
    %c0_i32_0 = arith.constant 0 : i32
    %c0_i32_1 = arith.constant 0 : i32
    return %c0_i32, %c0_i32_0 : i32, i32
  }
  func.func @transform_2(%arg0: i32) -> (i32, i32) {
    %c0_i32 = arith.constant 0 : i32
    %c0_i32_0 = arith.constant 0 : i32
    %c0_i32_1 = arith.constant 0 : i32
    return %c0_i32, %c0_i32_0 : i32, i32
  }
  func.func @transform_3(%arg0: i32) -> (i32, i32) {
    %c0_i32 = arith.constant 0 : i32
    %c0_i32_0 = arith.constant 0 : i32
    %c0_i32_1 = arith.constant 0 : i32
    return %c0_i32, %c0_i32_0 : i32, i32
  }
  func.func @transform_4(%arg0: i32) -> (i32, i32) {
    %c0_i32 = arith.constant 0 : i32
    %c0_i32_0 = arith.constant 0 : i32
    %c0_i32_1 = arith.constant 0 : i32
    return %c0_i32, %c0_i32_0 : i32, i32
  }
  func.func @transform_5(%arg0: i32) -> (i32, i32) {
    %c0_i32 = arith.constant 0 : i32
    %c0_i32_0 = arith.constant 0 : i32
    %c0_i32_1 = arith.constant 0 : i32
    return %c0_i32, %c0_i32_0 : i32, i32
  }
  func.func @transform_6(%arg0: i32) -> (i32, i32) {
    %c0_i32 = arith.constant 0 : i32
    %c0_i32_0 = arith.constant 0 : i32
    %c0_i32_1 = arith.constant 0 : i32
    return %c0_i32, %c0_i32_0 : i32, i32
  }
  func.func @transform_7(%arg0: i32) -> (i32, i32) {
    %c0_i32 = arith.constant 0 : i32
    %c0_i32_0 = arith.constant 0 : i32
    %c0_i32_1 = arith.constant 0 : i32
    return %c0_i32, %c0_i32_0 : i32, i32
  }
  func.func @transform_8(%arg0: i32) -> (i32, i32) {
    %c0_i32 = arith.constant 0 : i32
    %c0_i32_0 = arith.constant 0 : i32
    return %arg0, %c0_i32 : i32, i32
  }
}

</mosaic_0001>

<bundles_post_ra>
// kernel: tpu_custom_call.1
= control target key start
LH: loop header
LB: loop body
LE: loop exit
PB: predicated region body
PF: predicated region fallthrough
CT: control target
= control target key end

     0   :  { %13 = vsyncpa [#allocation4], 0  ;;  %s1623_s0 = inlined_call_operand.vmem [shape: bf16[128,128], index: 0, kind: input, shape index: {}]   ;;  %s1624_s1 = inlined_call_operand.vmem [shape: bf16[128,16], index: 1, kind: input, shape index: {}]   ;;  %s1625_s2 = inlined_call_operand.vmem [shape: bf16[16,128], index: 2, kind: input, shape index: {}]   ;;  %s1626_s3 = inlined_call_operand.vmem [shape: f32[1,128], index: 3, kind: input, shape index: {}]   ;;  %s1627_s4 = inlined_call_operand.vmem [shape: f32[1,128], index: 4, kind: input, shape index: {}]   ;;  %s1628_s5 = inlined_call_operand.hbm [shape: bf16[128,128], index: 5, kind: input, shape index: {}]   ;;  %s1629_s6 = inlined_call_operand.vmem [shape: f32[1,128], index: 6, kind: input, shape index: {}]   ;;  %s1630_s7 = inlined_call_operand.vmem [shape: f32[1,128], index: 7, kind: input, shape index: {}]   ;;  %s1631_s8 = inlined_call_operand.hbm [shape: bf16[128,128], index: 8, kind: output, shape index: {}]  }
   0x1   :  { %14 = vsyncpa [#allocation5], 0  ;;  %s1375_s27 = smov [#allocation3]   ;;  %s1327_s9 = scalar_lea.hbm %s1628_s5, 1024 }
   0x2   :  { %s30_s28 = sshll.u32 %s1375_s27, 4  ;;  %p1328_p0 = scmp.ne.s32.totalorder %s1628_s5, %s1327_s9  ;;  %s31_s28 = int_to_ptr.vmem [resolvable:$true] %s30_s28 }
   0x3   :  { %p1331_p1 = scmp.lt.u32.totalorder %s1327_s9, %s1628_s5 }
   0x5   :  { %p1333_p2 = pnand %p1331_p1, %p1328_p0 }
   0x7   :  { %1336 = shalt.err (!%p1333_p2)
}
   0x8   :  { %s1337_s14 = scalar_lea.vmem %s31_s28, 1024  ;;  %p1342_p4 = scmp.lt.s32.totalorder %s31_s28, %s31_s28 }
   0x9   :  { %p1338_p3 = scmp.ne.s32.totalorder %s31_s28, %s1337_s14  ;;  %p1343_p5 = scmp.lt.s32.totalorder %s1337_s14, %s1337_s14 }
   0xb   :  { %p1344_p6 = por %p1343_p5, %p1342_p4 }
   0xd   :  { %p1345_p7 = pnand %p1344_p6, %p1338_p3 }
   0xf   :  { %1348 = shalt.err (!%p1345_p7)
}
  0x10   :  { %s1376_s15 = smov 64   ;;  %s1377_s16 = smov 4  }
  0x11   :  { %36 = dma.hbm_to_vmem [thread:$0]  %s1628_s5, 1024, %s31_s28, [#allocation4], %s1376_s15, %s1376_s15, %s1377_s16  }
  0x12   :  { %1371 = dma.done.wait [#allocation4], 1024  }
  0x13   :  { %1372 = vsyncadd [#allocation4], 4294966272  ;;  %v1294_v0 = vld [vmem:[%s1625_s2] sm:$0xff]   ;;  %vm113_vm0 = vcmask 130048   ;;  %v1296_v2 = vld [vmem:[%s1624_s1 + $0x8] sm:$0xff]  }
  0x14   :  { %v1295_v1 = vld [vmem:[%s1624_s1] sm:$0xff]   ;;  %1160 = vmatprep.subr.bf16.mxu0 %v1294_v0  ;;  %v1297_v3 = vld [vmem:[%s1624_s1 + $0x10] sm:$0xff]   ;;  %v1298_v4 = vld [vmem:[%s1624_s1 + $0x18] sm:$0xff]  }
  0x15   :  { %1161 = vmatpush3.bf16.msra.mxu0 %v1294_v0  ;;  %1162 = vmatprep.mubr.msk.bf16.mxu0 %vm113_vm0, %v1295_v1  ;;  %v1299_v5 = vld [vmem:[%s1624_s1 + $0x20] sm:$0xff]   ;;  %v1300_v6 = vld [vmem:[%s1624_s1 + $0x28] sm:$0xff]   ;;  %v1301_v7 = vld [vmem:[%s1624_s1 + $0x30] sm:$0xff]  }
  0x16   :  { %v1302_v8 = vld [vmem:[%s1624_s1 + $0x38] sm:$0xff]   ;;  %v1303_v9 = vld [vmem:[%s1623_s0] sm:$0xff]   ;;  %v1312_v11 = vld [vmem:[#allocation3 + $0x8] sm:$0xff]  }
  0x17   :  { %1194 = vmatprep.mubr.bf16.mxu1 %v1303_v9  ;;  %v1311_v10 = vld [vmem:[#allocation3] sm:$0xff]   ;;  %v1313_v12 = vld [vmem:[#allocation3 + $0x10] sm:$0xff]   ;;  %v1314_v13 = vld [vmem:[#allocation3 + $0x18] sm:$0xff]  }
  0x18   :  { %1163 = vmatmul.mubr.msk.bf16.vlgmr.msra.gmra.mrb[0].mxu0 %vm113_vm0, %v1296_v2  ;;  %1210 = vmatprep.subr.bf16.mxu0 %v1311_v10  ;;  %v1315_v14 = vld [vmem:[#allocation3 + $0x20] sm:$0xff]   ;;  %v1304_v39 = vld [vmem:[%s1623_s0 + $0x8] sm:$0xff]   ;;  %v1305_v40 = vld [vmem:[%s1623_s0 + $0x10] sm:$0xff]  }
  0x19   :  { %1166 = vmatprep.mubr.msk.bf16.mxu0 %vm113_vm0, %v1297_v3  ;;  %1211 = vmatpush3.bf16.msra.mxu0 %v1311_v10  ;;  %v1306_v41 = vld [vmem:[%s1623_s0 + $0x18] sm:$0xff]   ;;  %v1307_v42 = vld [vmem:[%s1623_s0 + $0x20] sm:$0xff]   ;;  %v1308_v43 = vld [vmem:[%s1623_s0 + $0x28] sm:$0xff]  }
  0x1a   :  { %1212 = vmatprep.subr.bf16.mxu0 %v1312_v11  ;;  %v1309_v44 = vld [vmem:[%s1623_s0 + $0x30] sm:$0xff]   ;;  %v1310_v45 = vld [vmem:[%s1623_s0 + $0x38] sm:$0xff]   ;;  %v1316_v46 = vld [vmem:[#allocation3 + $0x28] sm:$0xff]  }
  0x1b   :  { %v1317_v47 = vld [vmem:[#allocation3 + $0x30] sm:$0xff]   ;;  %v1318_v48 = vld [vmem:[#allocation3 + $0x38] sm:$0xff]   ;;  %v1501_v49 = vld [vmem:[%s1626_s3] ss:$0 sm:$0xff] }
  0x1c   :  { %v1506_v51 = vld [vmem:[%s1627_s4] ss:$0 sm:$0xff] }
  0x1d   :  { %1213 = vmatpush3.bf16.msra.mxu0 %v1312_v11 }
  0x1e   :  { %1214 = vmatprep.subr.bf16.mxu0 %v1313_v12 }
  0x20   :  { %1167 = vmatmul.mubr.msk.bf16.gmra.mrb[4].mxu0 %vm113_vm0, %v1298_v4 }
  0x21   :  { %1170 = vmatprep.mubr.msk.bf16.mxu0 %vm113_vm0, %v1299_v5  ;;  %1215 = vmatpush3.bf16.msra.mxu0 %v1313_v12 }
  0x22   :  { %1216 = vmatprep.subr.bf16.mxu0 %v1314_v13 }
  0x25   :  { %1217 = vmatpush3.bf16.msra.mxu0 %v1314_v13 }
  0x26   :  { %1218 = vmatprep.subr.bf16.mxu0 %v1315_v14 }
  0x28   :  { %1171 = vmatmul.mubr.msk.bf16.gmra.mrb[8].mxu0 %vm113_vm0, %v1300_v6 }
  0x29   :  { %1174 = vmatprep.mubr.msk.bf16.mxu0 %vm113_vm0, %v1301_v7  ;;  %1219 = vmatpush3.bf16.msra.mxu0 %v1315_v14 }
  0x2a   :  { %1220 = vmatprep.subr.bf16.mxu0 %v1316_v46 }
  0x2d   :  { %1221 = vmatpush3.bf16.msra.mxu0 %v1316_v46 }
  0x2e   :  { %1222 = vmatprep.subr.bf16.mxu0 %v1317_v47 }
  0x30   :  { %1175 = vmatmul.mubr.msk.bf16.gmra.mrb[12].mxu0 %vm113_vm0, %v1302_v8 }
  0x31   :  { %1223 = vmatpush3.bf16.msra.mxu0 %v1317_v47 }
  0x32   :  { %1224 = vmatprep.subr.bf16.mxu0 %v1318_v48 }
  0x35   :  { %1225 = vmatpush3.bf16.msra.mxu0 %v1318_v48 }
  0xeb   :  { %v1164_v15 = vpop.f32.mrb[0].mxu0 }
  0xec   :  { %v172_v16 = vpop.f32.mrb[1].mxu0 }
  0xed   :  { %v1165_v17 = vpop.f32.mrb[2].mxu0 }
  0xee   :  { %v252_v18 = vpack.c.bf16 %v1165_v17, %v1164_v15  ;;  %v175_v19 = vpop.f32.mrb[3].mxu0 }
  0xef   :  { %v251_v20 = vpack.c.bf16 %v175_v19, %v172_v16 }
  0xf1   :  { %1178 = vmatprep.subr.bf16.mxu1 %v251_v20 }
  0xf2   :  { %1179 = vmatpush3.bf16.msra.mxu1 %v251_v20 }
  0xf3   :  { %v1168_v21 = vpop.f32.mrb[4].mxu0  ;;  %1180 = vmatprep.subr.bf16.mxu1 %v252_v18 }
  0xf4   :  { %v188_v22 = vpop.f32.mrb[5].mxu0 }
  0xf5   :  { %v1169_v23 = vpop.f32.mrb[6].mxu0 }
  0xf6   :  { %v254_v24 = vpack.c.bf16 %v1169_v23, %v1168_v21  ;;  %v191_v25 = vpop.f32.mrb[7].mxu0  ;;  %1181 = vmatpush3.bf16.msra.mxu1 %v252_v18 }
  0xf7   :  { %v253_v26 = vpack.c.bf16 %v191_v25, %v188_v22 }
  0xf9   :  { %1182 = vmatprep.subr.bf16.mxu1 %v253_v26 }
  0xfa   :  { %1183 = vmatpush3.bf16.msra.mxu1 %v253_v26 }
  0xfb   :  { %v1172_v27 = vpop.f32.mrb[8].mxu0  ;;  %1184 = vmatprep.subr.bf16.mxu1 %v254_v24 }
  0xfc   :  { %v204_v28 = vpop.f32.mrb[9].mxu0 }
  0xfd   :  { %v1173_v29 = vpop.f32.mrb[10].mxu0 }
  0xfe   :  { %v256_v30 = vpack.c.bf16 %v1173_v29, %v1172_v27  ;;  %v207_v31 = vpop.f32.mrb[11].mxu0  ;;  %1185 = vmatpush3.bf16.msra.mxu1 %v254_v24 }
  0xff   :  { %v255_v32 = vpack.c.bf16 %v207_v31, %v204_v28 }
 0x101   :  { %1186 = vmatprep.subr.bf16.mxu1 %v255_v32 }
 0x102   :  { %1187 = vmatpush3.bf16.msra.mxu1 %v255_v32 }
 0x103   :  { %v1176_v33 = vpop.f32.mrb[12].mxu0  ;;  %1188 = vmatprep.subr.bf16.mxu1 %v256_v30 }
 0x104   :  { %v220_v34 = vpop.f32.mrb[13].mxu0 }
 0x105   :  { %v1177_v35 = vpop.f32.mrb[14].mxu0 }
 0x106   :  { %v258_v36 = vpack.c.bf16 %v1177_v35, %v1176_v33  ;;  %v223_v37 = vpop.f32.mrb[15].mxu0  ;;  %1189 = vmatpush3.bf16.msra.mxu1 %v256_v30 }
 0x107   :  { %v257_v38 = vpack.c.bf16 %v223_v37, %v220_v34 }
 0x109   :  { %1190 = vmatprep.subr.bf16.mxu1 %v257_v38 }
 0x10a   :  { %1191 = vmatpush3.bf16.msra.mxu1 %v257_v38 }
 0x10b   :  { %1192 = vmatprep.subr.bf16.mxu1 %v258_v36 }
 0x10e   :  { %1193 = vmatpush3.bf16.msra.mxu1 %v258_v36 }
 0x111   :  { %1195 = vmatmul.mubr.bf16.vlgmr.msra.gmra.mrb[0].mxu1 %v1304_v39 }
 0x112   :  { %1198 = vmatprep.mubr.bf16.mxu1 %v1305_v40 }
 0x119   :  { %1199 = vmatmul.mubr.bf16.gmra.mrb[4].mxu1 %v1306_v41 }
 0x11a   :  { %1202 = vmatprep.mubr.bf16.mxu1 %v1307_v42 }
 0x121   :  { %1203 = vmatmul.mubr.bf16.gmra.mrb[8].mxu1 %v1308_v43 }
 0x122   :  { %1206 = vmatprep.mubr.bf16.mxu1 %v1309_v44 }
 0x129   :  { %1207 = vmatmul.mubr.bf16.gmra.mrb[12].mxu1 %v1310_v45 }
 0x1e4   :  { %v1196_v50 = vpop.f32.mrb[0].mxu1 }
 0x1e5   :  { %v357_v52 = vadd.f32 %v1196_v50, %v1501_v49  ;;  %v348_v53 = vpop.f32.mrb[1].mxu1 }
 0x1e6   :  { %v349_v54 = vadd.f32 %v1501_v49, %v348_v53  ;;  %v1197_v55 = vpop.f32.mrb[2].mxu1 }
 0x1e7   :  { %v436_v56 = vmul.f32 %v1506_v51, %v357_v52  ;;  %v360_v57 = vadd.f32 %v1197_v55, %v1501_v49  ;;  %v351_v58 = vpop.f32.mrb[3].mxu1  ;;  %vm413_vm1 = vcmp.ge.f32.partialorder %v357_v52, 0.0 }
 0x1e8   :  { %v434_v59 = vmul.f32 %v1506_v51, %v349_v54  ;;  %v352_v60 = vadd.f32 %v1501_v49, %v351_v58  ;;  %vm411_vm2 = vcmp.ge.f32.partialorder %v349_v54, 0.0 }
 0x1e9   :  { %vm414_vm3 = vcmp.ge.f32.partialorder %v360_v57, 0.0  ;;  %v437_v61 = vmul.f32 %v1506_v51, %v360_v57  ;;  %v452_v63 = vsel %vm413_vm1, %v357_v52, %v436_v56 }
 0x1ea   :  { %vm412_vm4 = vcmp.ge.f32.partialorder %v352_v60, 0.0  ;;  %v435_v62 = vmul.f32 %v1506_v51, %v352_v60  ;;  %v450_v3 = vsel %vm411_vm2, %v349_v54, %v434_v59 }
 0x1eb   :  { %v453_v0 = vsel %vm414_vm3, %v360_v57, %v437_v61  ;;  %v1323_v61 = vld [vmem:[%s1623_s0] sm:$0xff]  }
 0x1ec   :  { %v467_v1 = vpack.c.bf16 %v453_v0, %v452_v63  ;;  %v1200_v2 = vpop.f32.mrb[4].mxu1  ;;  %v451_v4 = vsel %vm412_vm4, %v352_v60, %v435_v62 }
 0x1ed   :  { %v373_v5 = vadd.f32 %v1200_v2, %v1501_v49  ;;  %v364_v6 = vpop.f32.mrb[5].mxu1  ;;  %v466_v7 = vpack.c.bf16 %v451_v4, %v450_v3 }
 0x1ee   :  { %v365_v8 = vadd.f32 %v1501_v49, %v364_v6  ;;  %v1201_v9 = vpop.f32.mrb[6].mxu1 }
 0x1ef   :  { %v440_v10 = vmul.f32 %v1506_v51, %v373_v5  ;;  %v376_v11 = vadd.f32 %v1201_v9, %v1501_v49  ;;  %v367_v12 = vpop.f32.mrb[7].mxu1  ;;  %1226 = vmatprep.mubr.bf16.mxu0 %v466_v7  ;;  %vm417_vm5 = vcmp.ge.f32.partialorder %v373_v5, 0.0 }
 0x1f0   :  { %v438_v13 = vmul.f32 %v1506_v51, %v365_v8  ;;  %v368_v14 = vadd.f32 %v1501_v49, %v367_v12  ;;  %1227 = vmatmul.mubr.bf16.vlgmr.msra.gmra.mrb[16].mxu0 %v467_v1  ;;  %vm415_vm6 = vcmp.ge.f32.partialorder %v365_v8, 0.0 }
 0x1f1   :  { %vm418_vm7 = vcmp.ge.f32.partialorder %v376_v11, 0.0  ;;  %v441_v15 = vmul.f32 %v1506_v51, %v376_v11  ;;  %v456_v17 = vsel %vm417_vm5, %v373_v5, %v440_v10 }
 0x1f2   :  { %vm416_vm8 = vcmp.ge.f32.partialorder %v368_v14, 0.0  ;;  %v439_v16 = vmul.f32 %v1506_v51, %v368_v14  ;;  %v454_v20 = vsel %vm415_vm6, %v365_v8, %v438_v13 }
 0x1f3   :  { %v457_v18 = vsel %vm418_vm7, %v376_v11, %v441_v15 }
 0x1f4   :  { %v1204_v19 = vpop.f32.mrb[8].mxu1  ;;  %v455_v21 = vsel %vm416_vm8, %v368_v14, %v439_v16  ;;  %v469_v22 = vpack.c.bf16 %v457_v18, %v456_v17 }
 0x1f5   :  { %v389_v23 = vadd.f32 %v1204_v19, %v1501_v49  ;;  %v380_v24 = vpop.f32.mrb[9].mxu1  ;;  %v468_v25 = vpack.c.bf16 %v455_v21, %v454_v20  ;;  %v1320_v21 = vld [vmem:[%s1623_s0 + $0x18] sm:$0xff]  }
 0x1f6   :  { %v381_v26 = vadd.f32 %v1501_v49, %v380_v24  ;;  %v1205_v27 = vpop.f32.mrb[10].mxu1  ;;  %v1322_v24 = vld [vmem:[%s1623_s0 + $0x28] sm:$0xff]  }
 0x1f7   :  { %v444_v28 = vmul.f32 %v1506_v51, %v389_v23  ;;  %v392_v29 = vadd.f32 %v1205_v27, %v1501_v49  ;;  %v383_v30 = vpop.f32.mrb[11].mxu1  ;;  %1230 = vmatprep.mubr.bf16.mxu0 %v468_v25  ;;  %vm421_vm9 = vcmp.ge.f32.partialorder %v389_v23, 0.0  ;;  %v1325_v25 = vld [vmem:[%s1623_s0 + $0x30] sm:$0xff]   ;;  %v1567_v27 = vld [vmem:[%s1629_s6] ss:$0 sm:$0xff] }
 0x1f8   :  { %v442_v31 = vmul.f32 %v1506_v51, %v381_v26  ;;  %v384_v32 = vadd.f32 %v1501_v49, %v383_v30  ;;  %1231 = vmatmul.mubr.bf16.gmra.mrb[20].mxu0 %v469_v22  ;;  %vm419_vm10 = vcmp.ge.f32.partialorder %v381_v26, 0.0  ;;  %v1324_v22 = vld [vmem:[%s1623_s0 + $0x8] sm:$0xff]  }
 0x1f9   :  { %vm422_vm11 = vcmp.ge.f32.partialorder %v392_v29, 0.0  ;;  %v445_v33 = vmul.f32 %v1506_v51, %v392_v29  ;;  %v460_v35 = vsel %vm421_vm9, %v389_v23, %v444_v28  ;;  %v1321_v23 = vld [vmem:[%s1623_s0 + $0x20] sm:$0xff]  }
 0x1fa   :  { %vm420_vm12 = vcmp.ge.f32.partialorder %v384_v32, 0.0  ;;  %v443_v34 = vmul.f32 %v1506_v51, %v384_v32  ;;  %v458_v38 = vsel %vm419_vm10, %v381_v26, %v442_v31  ;;  %v1326_v26 = vld [vmem:[%s1623_s0 + $0x38] sm:$0xff]  }
 0x1fb   :  { %v461_v36 = vsel %vm422_vm11, %v392_v29, %v445_v33  ;;  %v1572_v29 = vld [vmem:[%s1630_s7] ss:$0 sm:$0xff] }
 0x1fc   :  { %v1208_v37 = vpop.f32.mrb[12].mxu1  ;;  %v459_v39 = vsel %vm420_vm12, %v384_v32, %v443_v34  ;;  %v471_v40 = vpack.c.bf16 %v461_v36, %v460_v35 }
 0x1fd   :  { %v405_v41 = vadd.f32 %v1208_v37, %v1501_v49  ;;  %v396_v42 = vpop.f32.mrb[13].mxu1  ;;  %v470_v43 = vpack.c.bf16 %v459_v39, %v458_v38 }
 0x1fe   :  { %v397_v44 = vadd.f32 %v1501_v49, %v396_v42  ;;  %v1209_v45 = vpop.f32.mrb[14].mxu1 }
 0x1ff   :  { %v448_v46 = vmul.f32 %v1506_v51, %v405_v41  ;;  %v408_v47 = vadd.f32 %v1209_v45, %v1501_v49  ;;  %v399_v48 = vpop.f32.mrb[15].mxu1  ;;  %1234 = vmatprep.mubr.bf16.mxu0 %v470_v43  ;;  %vm425_vm13 = vcmp.ge.f32.partialorder %v405_v41, 0.0 }
 0x200   :  { %v446_v50 = vmul.f32 %v1506_v51, %v397_v44  ;;  %v400_v52 = vadd.f32 %v1501_v49, %v399_v48  ;;  %1235 = vmatmul.mubr.bf16.gmra.mrb[24].mxu0 %v471_v40  ;;  %vm423_vm14 = vcmp.ge.f32.partialorder %v397_v44, 0.0  ;;  %v1319_v49 = vld [vmem:[%s1623_s0 + $0x10] sm:$0xff]   ;;  %s1378_s0 = smov [#allocation6]  }
 0x201   :  { %vm426_vm15 = vcmp.ge.f32.partialorder %v408_v47, 0.0  ;;  %v449_v53 = vmul.f32 %v1506_v51, %v408_v47  ;;  %v464_v55 = vsel %vm425_vm13, %v405_v41, %v448_v46  ;;  %1262 = vmatprep.mubr.bf16.mxu1 %v1319_v49  ;;  %s967_s6 = sshll.u32 %s1378_s0, 4  ;;  %s968_s6 = int_to_ptr.vmem [resolvable:$true] %s967_s6 }
 0x202   :  { %vm424_vm0 = vcmp.ge.f32.partialorder %v400_v52, 0.0  ;;  %v447_v54 = vmul.f32 %v1506_v51, %v400_v52  ;;  %v462_v57 = vsel %vm423_vm14, %v397_v44, %v446_v50  ;;  %s1349_s7 = scalar_lea.vmem %s968_s6, 1024  ;;  %p1354_p9 = scmp.lt.s32.totalorder %s968_s6, %s968_s6 }
 0x203   :  { %v465_v56 = vsel %vm426_vm15, %v408_v47, %v449_v53  ;;  %p1350_p8 = scmp.ne.s32.totalorder %s968_s6, %s1349_s7  ;;  %p1355_p10 = scmp.lt.s32.totalorder %s1349_s7, %s1349_s7 }
 0x204   :  { %v463_v58 = vsel %vm424_vm0, %v400_v52, %v447_v54  ;;  %v473_v59 = vpack.c.bf16 %v465_v56, %v464_v55 }
 0x205   :  { %v472_v60 = vpack.c.bf16 %v463_v58, %v462_v57  ;;  %p1356_p11 = por %p1355_p10, %p1354_p9 }
 0x207   :  { %1238 = vmatprep.mubr.bf16.mxu0 %v472_v60  ;;  %p1357_p12 = pnand %p1356_p11, %p1350_p8 }
 0x208   :  { %1239 = vmatmul.mubr.bf16.gmra.mrb[28].mxu0 %v473_v59 }
 0x209   :  { %1258 = vmatprep.mubr.bf16.mxu0 %v1323_v61 }
 0x2c3   :  { %v1228_v62 = vpop.f32.mrb[16].mxu0 }
 0x2c4   :  { %v572_v51 = vpop.f32.mrb[17].mxu0 }
 0x2c5   :  { %v1229_v63 = vpop.f32.mrb[18].mxu0 }
 0x2c6   :  { %v636_v0 = vpack.c.bf16 %v1229_v63, %v1228_v62  ;;  %v575_v1 = vpop.f32.mrb[19].mxu0 }
 0x2c7   :  { %v635_v2 = vpack.c.bf16 %v575_v1, %v572_v51 }
 0x2c9   :  { %1242 = vmatprep.subr.bf16.mxu0 %v635_v2  ;;  %1274 = vmatprep.subr.bf16.mxu1 %v635_v2 }
 0x2ca   :  { %1243 = vmatpush3.bf16.msra.mxu0 %v635_v2  ;;  %1282 = vmatpush3.bf16.msra.mxu1 %v635_v2 }
 0x2cb   :  { %v1232_v3 = vpop.f32.mrb[20].mxu0  ;;  %1244 = vmatprep.subr.bf16.mxu0 %v636_v0  ;;  %1275 = vmatprep.subr.bf16.mxu1 %v636_v0 }
 0x2cc   :  { %v588_v4 = vpop.f32.mrb[21].mxu0 }
 0x2cd   :  { %v1233_v5 = vpop.f32.mrb[22].mxu0 }
 0x2ce   :  { %v638_v6 = vpack.c.bf16 %v1233_v5, %v1232_v3  ;;  %v591_v7 = vpop.f32.mrb[23].mxu0  ;;  %1245 = vmatpush3.bf16.msra.mxu0 %v636_v0  ;;  %1283 = vmatpush3.bf16.msra.mxu1 %v636_v0 }
 0x2cf   :  { %v637_v8 = vpack.c.bf16 %v591_v7, %v588_v4 }
 0x2d1   :  { %1246 = vmatprep.subr.bf16.mxu0 %v637_v8  ;;  %1276 = vmatprep.subr.bf16.mxu1 %v637_v8 }
 0x2d2   :  { %1247 = vmatpush3.bf16.msra.mxu0 %v637_v8  ;;  %1284 = vmatpush3.bf16.msra.mxu1 %v637_v8 }
 0x2d3   :  { %v1236_v9 = vpop.f32.mrb[24].mxu0  ;;  %1248 = vmatprep.subr.bf16.mxu0 %v638_v6  ;;  %1277 = vmatprep.subr.bf16.mxu1 %v638_v6 }
 0x2d4   :  { %v604_v10 = vpop.f32.mrb[25].mxu0 }
 0x2d5   :  { %v1237_v11 = vpop.f32.mrb[26].mxu0 }
 0x2d6   :  { %v640_v12 = vpack.c.bf16 %v1237_v11, %v1236_v9  ;;  %v607_v13 = vpop.f32.mrb[27].mxu0  ;;  %1249 = vmatpush3.bf16.msra.mxu0 %v638_v6  ;;  %1285 = vmatpush3.bf16.msra.mxu1 %v638_v6 }
 0x2d7   :  { %v639_v14 = vpack.c.bf16 %v607_v13, %v604_v10 }
 0x2d9   :  { %1250 = vmatprep.subr.bf16.mxu0 %v639_v14  ;;  %1278 = vmatprep.subr.bf16.mxu1 %v639_v14 }
 0x2da   :  { %1251 = vmatpush3.bf16.msra.mxu0 %v639_v14  ;;  %1286 = vmatpush3.bf16.msra.mxu1 %v639_v14 }
 0x2db   :  { %v1240_v15 = vpop.f32.mrb[28].mxu0  ;;  %1252 = vmatprep.subr.bf16.mxu0 %v640_v12  ;;  %1279 = vmatprep.subr.bf16.mxu1 %v640_v12 }
 0x2dc   :  { %v620_v16 = vpop.f32.mrb[29].mxu0 }
 0x2dd   :  { %v1241_v17 = vpop.f32.mrb[30].mxu0 }
 0x2de   :  { %v642_v18 = vpack.c.bf16 %v1241_v17, %v1240_v15  ;;  %v623_v19 = vpop.f32.mrb[31].mxu0  ;;  %1253 = vmatpush3.bf16.msra.mxu0 %v640_v12  ;;  %1287 = vmatpush3.bf16.msra.mxu1 %v640_v12 }
 0x2df   :  { %v641_v20 = vpack.c.bf16 %v623_v19, %v620_v16 }
 0x2e1   :  { %1254 = vmatprep.subr.bf16.mxu0 %v641_v20  ;;  %1280 = vmatprep.subr.bf16.mxu1 %v641_v20 }
 0x2e2   :  { %1255 = vmatpush3.bf16.msra.mxu0 %v641_v20  ;;  %1288 = vmatpush3.bf16.msra.mxu1 %v641_v20 }
 0x2e3   :  { %1256 = vmatprep.subr.bf16.mxu0 %v642_v18  ;;  %1281 = vmatprep.subr.bf16.mxu1 %v642_v18 }
 0x2e6   :  { %1257 = vmatpush3.bf16.msra.mxu0 %v642_v18  ;;  %1289 = vmatpush3.bf16.msra.mxu1 %v642_v18 }
 0x2e9   :  { %1263 = vmatmul.mubr.bf16.vlgmr.msra.gmra.mrb[16].mxu1 %v1320_v21  ;;  %1259 = vmatmul.mubr.bf16.vlgmr.msra.gmra.mrb[32].mxu0 %v1324_v22 }
 0x2ea   :  { %1266 = vmatprep.mubr.bf16.mxu1 %v1321_v23 }
 0x2f1   :  { %1267 = vmatmul.mubr.bf16.gmra.mrb[20].mxu1 %v1322_v24 }
 0x2f2   :  { %1270 = vmatprep.mubr.bf16.mxu1 %v1325_v25 }
 0x2f9   :  { %1271 = vmatmul.mubr.bf16.gmra.mrb[24].mxu1 %v1326_v26 }
 0x3bc   :  { %v1264_v28 = vpop.f32.mrb[16].mxu1  ;;  %v1260_v30 = vpop.f32.mrb[32].mxu0 }
 0x3bd   :  { %v789_v31 = vadd.f32 %v1264_v28, %v1567_v27  ;;  %v780_v32 = vpop.f32.mrb[17].mxu1  ;;  %v773_v33 = vadd.f32 %v1260_v30, %v1567_v27  ;;  %v764_v34 = vpop.f32.mrb[33].mxu0 }
 0x3be   :  { %v781_v35 = vadd.f32 %v1567_v27, %v780_v32  ;;  %v1265_v36 = vpop.f32.mrb[18].mxu1  ;;  %v1261_v37 = vpop.f32.mrb[34].mxu0  ;;  %v765_v41 = vadd.f32 %v1567_v27, %v764_v34 }
 0x3bf   :  { %vm833_vm1 = vcmp.ge.f32.partialorder %v789_v31, 0.0  ;;  %v856_v38 = vmul.f32 %v1572_v29, %v789_v31  ;;  %v792_v39 = vadd.f32 %v1265_v36, %v1567_v27  ;;  %v783_v40 = vpop.f32.mrb[19].mxu1  ;;  %v767_v42 = vpop.f32.mrb[35].mxu0  ;;  %vm829_vm4 = vcmp.ge.f32.partialorder %v773_v33, 0.0 }
 0x3c0   :  { %v854_v43 = vmul.f32 %v1572_v29, %v781_v35  ;;  %v784_v44 = vadd.f32 %v1567_v27, %v783_v40  ;;  %vm831_vm2 = vcmp.ge.f32.partialorder %v781_v35, 0.0  ;;  %v852_v48 = vmul.f32 %v1572_v29, %v773_v33 }
 0x3c1   :  { %vm834_vm3 = vcmp.ge.f32.partialorder %v792_v39, 0.0  ;;  %v857_v45 = vmul.f32 %v1572_v29, %v792_v39  ;;  %v872_v46 = vsel %vm833_vm1, %v789_v31, %v856_v38  ;;  %v850_v52 = vmul.f32 %v1572_v29, %v765_v41 }
 0x3c2   :  { %vm832_vm5 = vcmp.ge.f32.partialorder %v784_v44, 0.0  ;;  %v855_v47 = vmul.f32 %v1572_v29, %v784_v44  ;;  %v776_v53 = vadd.f32 %v1261_v37, %v1567_v27  ;;  %v768_v54 = vadd.f32 %v1567_v27, %v767_v42 }
 0x3c3   :  { %v873_v50 = vsel %vm834_vm3, %v792_v39, %v857_v45  ;;  %v870_v55 = vsel %vm831_vm2, %v781_v35, %v854_v43  ;;  %vm827_vm6 = vcmp.ge.f32.partialorder %v765_v41, 0.0  ;;  %v868_v51 = vsel %vm829_vm4, %v773_v33, %v852_v48 }
 0x3c4   :  { %v1074_v56 = vpack.c.bf16 %v873_v50, %v872_v46  ;;  %v871_v57 = vsel %vm832_vm5, %v784_v44, %v855_v47  ;;  %v1268_v58 = vpop.f32.mrb[20].mxu1  ;;  %vm830_vm7 = vcmp.ge.f32.partialorder %v776_v53, 0.0  ;;  %v853_v63 = vmul.f32 %v1572_v29, %v776_v53 }
 0x3c5   :  { %v1069_v59 = vpack.c.bf16 %v871_v57, %v870_v55  ;;  %v805_v60 = vadd.f32 %v1268_v58, %v1567_v27  ;;  %v796_v49 = vpop.f32.mrb[21].mxu1  ;;  %v851_v0 = vmul.f32 %v1572_v29, %v768_v54  ;;  %v866_v4 = vsel %vm827_vm6, %v765_v41, %v850_v52 }
 0x3c6   :  { %1098 = vst [vmem:[#allocation6 + $0x18] sm:$0xff] %v1074_v56   ;;  %v797_v61 = vadd.f32 %v1567_v27, %v796_v49  ;;  %v1269_v62 = vpop.f32.mrb[22].mxu1  ;;  %vm828_vm8 = vcmp.ge.f32.partialorder %v768_v54, 0.0  ;;  %v869_v7 = vsel %vm830_vm7, %v776_v53, %v853_v63 }
 0x3c7   :  { %1097 = vst [vmem:[#allocation6 + $0x10] sm:$0xff] %v1069_v59   ;;  %v860_v1 = vmul.f32 %v1572_v29, %v805_v60  ;;  %v808_v2 = vadd.f32 %v1269_v62, %v1567_v27  ;;  %v799_v3 = vpop.f32.mrb[23].mxu1  ;;  %vm837_vm9 = vcmp.ge.f32.partialorder %v805_v60, 0.0  ;;  %v1064_v9 = vpack.c.bf16 %v869_v7, %v868_v51 }
 0x3c8   :  { %v858_v5 = vmul.f32 %v1572_v29, %v797_v61  ;;  %v800_v6 = vadd.f32 %v1567_v27, %v799_v3  ;;  %vm835_vm10 = vcmp.ge.f32.partialorder %v797_v61, 0.0  ;;  %v867_v11 = vsel %vm828_vm8, %v768_v54, %v851_v0 }
 0x3c9   :  { %vm838_vm11 = vcmp.ge.f32.partialorder %v808_v2, 0.0  ;;  %v861_v8 = vmul.f32 %v1572_v29, %v808_v2  ;;  %v876_v12 = vsel %vm837_vm9, %v805_v60, %v860_v1  ;;  %1096 = vst [vmem:[#allocation6 + $0x8] sm:$0xff] %v1064_v9   ;;  %v1059_v14 = vpack.c.bf16 %v867_v11, %v866_v4 }
 0x3ca   :  { %vm836_vm12 = vcmp.ge.f32.partialorder %v800_v6, 0.0  ;;  %v859_v10 = vmul.f32 %v1572_v29, %v800_v6  ;;  %v874_v15 = vsel %vm835_vm10, %v797_v61, %v858_v5 }
 0x3cb   :  { %v877_v13 = vsel %vm838_vm11, %v808_v2, %v861_v8  ;;  %1060 = vst [vmem:[#allocation6] sm:$0xff] %v1059_v14  }
 0x3cc   :  { %v1084_v16 = vpack.c.bf16 %v877_v13, %v876_v12  ;;  %v875_v17 = vsel %vm836_vm12, %v800_v6, %v859_v10  ;;  %v1272_v18 = vpop.f32.mrb[24].mxu1 }
 0x3cd   :  { %v1079_v19 = vpack.c.bf16 %v875_v17, %v874_v15  ;;  %v821_v20 = vadd.f32 %v1272_v18, %v1567_v27  ;;  %v812_v21 = vpop.f32.mrb[25].mxu1 }
 0x3ce   :  { %1100 = vst [vmem:[#allocation6 + $0x28] sm:$0xff] %v1084_v16   ;;  %v813_v22 = vadd.f32 %v1567_v27, %v812_v21  ;;  %v1273_v23 = vpop.f32.mrb[26].mxu1 }
 0x3cf   :  { %1099 = vst [vmem:[#allocation6 + $0x20] sm:$0xff] %v1079_v19   ;;  %v864_v24 = vmul.f32 %v1572_v29, %v821_v20  ;;  %v824_v25 = vadd.f32 %v1273_v23, %v1567_v27  ;;  %v815_v26 = vpop.f32.mrb[27].mxu1  ;;  %vm841_vm13 = vcmp.ge.f32.partialorder %v821_v20, 0.0 }
 0x3d0   :  { %v862_v28 = vmul.f32 %v1572_v29, %v813_v22  ;;  %v816_v30 = vadd.f32 %v1567_v27, %v815_v26  ;;  %vm839_vm14 = vcmp.ge.f32.partialorder %v813_v22, 0.0 }
 0x3d1   :  { %vm842_vm15 = vcmp.ge.f32.partialorder %v824_v25, 0.0  ;;  %v865_v31 = vmul.f32 %v1572_v29, %v824_v25  ;;  %v880_v33 = vsel %vm841_vm13, %v821_v20, %v864_v24 }
 0x3d2   :  { %vm840_vm0 = vcmp.ge.f32.partialorder %v816_v30, 0.0  ;;  %v863_v32 = vmul.f32 %v1572_v29, %v816_v30  ;;  %v878_v35 = vsel %vm839_vm14, %v813_v22, %v862_v28 }
 0x3d3   :  { %v881_v34 = vsel %vm842_vm15, %v824_v25, %v865_v31 }
 0x3d4   :  { %v1094_v36 = vpack.c.bf16 %v881_v34, %v880_v33  ;;  %v879_v37 = vsel %vm840_vm0, %v816_v30, %v863_v32 }
 0x3d5   :  { %v1089_v38 = vpack.c.bf16 %v879_v37, %v878_v35 }
 0x3d6   :  { %1102 = vst [vmem:[#allocation6 + $0x38] sm:$0xff] %v1094_v36  }
 0x3d7   :  { %1101 = vst [vmem:[#allocation6 + $0x30] sm:$0xff] %v1089_v38  }
 0x3d8   :  { %1360 = shalt.err (!%p1357_p12)
}
 0x3d9   :  { %s1361_s29 = scalar_lea.hbm %s1631_s8, 1024 }
 0x3da   :  { %p1362_p13 = scmp.ne.s32.totalorder %s1631_s8, %s1361_s29  ;;  %p1365_p0 = scmp.lt.u32.totalorder %s1361_s29, %s1631_s8 }
 0x3dc   :  { %p1367_p1 = pnand %p1365_p0, %p1362_p13 }
 0x3de   :  { %1370 = shalt.err (!%p1367_p1)
}
 0x3df   :  { %973 = dma.vmem_to_hbm [thread:$0]  %s968_s6, 1024, %s1631_s8, [#allocation5], %s1376_s15, %s1376_s15, %s1377_s16  }
 0x3e0   :  { %1373 = dma.done.wait [#allocation5], 1024  }
 0x3e1   :  { %1374 = vsyncadd [#allocation5], 4294966272 }
 0x3e2   :  { %977 = vsyncpa [#allocation4], 1 }
 0x3e3   :  { %978 = vsyncpa [#allocation5], 1 }

</bundles_post_ra>
